<compile_context>
chip_gen: v6e
topology: v6e:2x2x1
jax: 0.10.0
libtpu: 0.0.40
codegen_flags: <defaults>
</compile_context>

<pallas_src>
import jax
import jax.numpy as jnp
from jax.experimental import pallas as pl
from jax.experimental.pallas import tpu as pltpu

HIDDEN = 128
DEFAULT_TILE_B = 1024  # ~512 KiB f32 out-block; x2 double-buffered fits all gens


def speed_kernel(x_ref, w_ref, b_ref, o_ref):
    # x_ref: (TILE_B, 1), w_ref: (1, 128), b_ref: (1, 128), o_ref: (TILE_B, 128)
    x = x_ref[...]
    w = w_ref[...]
    b = b_ref[...]
    # fc_1 with in_features=1: outer product + bias -> pure VPU broadcast mul/add
    y = x * w + b
    # do_1: dropout(p=0.5) in eval mode == identity
    # relu
    o_ref[...] = jnp.maximum(y, 0.0).astype(o_ref.dtype)


def speed_module(x, w_t, bias, *, tile_b=DEFAULT_TILE_B):
    """x: (B, 1) f32, w_t: (1, 128) f32, bias: (128,) f32 -> (B, 128) f32."""
    B = x.shape[0]
    bias2d = bias.reshape(1, HIDDEN)

    # Block second-to-last dim must be a multiple of 8 or equal the full dim.
    if B <= tile_b:
        tile_b = B          # single block: full-extent dim always satisfies the rule
    grid = (pl.cdiv(B, tile_b),)

    return pl.pallas_call(
        speed_kernel,
        out_shape=jax.ShapeDtypeStruct((B, HIDDEN), jnp.float32),
        grid=grid,
        in_specs=[
            pl.BlockSpec((tile_b, 1), lambda i: (i, 0)),       # x: moves with grid
            pl.BlockSpec((1, HIDDEN), lambda i: (0, 0)),       # w_t: constant block
            pl.BlockSpec((1, HIDDEN), lambda i: (0, 0)),       # bias: constant block
        ],
        out_specs=pl.BlockSpec((tile_b, HIDDEN), lambda i: (i, 0)),
        compiler_params=pltpu.CompilerParams(
            dimension_semantics=("parallel",),
        ),
    )(x, w_t, bias2d)


def init_params(key):
    # Mimic PyTorch nn.Linear(1, 128) default init: U(-1/sqrt(in), 1/sqrt(in)), in=1.
    kw, kb = jax.random.split(key)
    bound = 1.0  # 1/sqrt(1)
    w = jax.random.uniform(kw, (HIDDEN, 1), jnp.float32, -bound, bound)  # (out, in)
    b = jax.random.uniform(kb, (HIDDEN,), jnp.float32, -bound, bound)
    return w, b


if __name__ == "__main__":
    key = jax.random.PRNGKey(0)
    kx, kp = jax.random.split(key)

    B = 16  # small batch (speed scalar per sample)
    x = jax.random.normal(kx, (B, 1), jnp.float32)
    w, b = init_params(kp)
    w_t = jnp.transpose(w)  # (1, 128)

    # Use a small tile so the test exercises a multi-step grid (2 blocks of 8 rows).
    out = speed_module(x, w_t, b, tile_b=8)
    out = jax.block_until_ready(out)

    # Correctness check against plain JAX reference (eval-mode dropout = identity).
    ref = jnp.maximum(x @ w.T + b[None, :], 0.0)
    assert out.shape == (B, HIDDEN)
    assert jnp.allclose(out, ref, atol=1e-5, rtol=1e-5)

    # Also check the default (single-block) path.
    out2 = jax.block_until_ready(speed_module(x, w_t, b))
    assert jnp.allclose(out2, ref, atol=1e-5, rtol=1e-5)

    print("KERNEL_OK")
</pallas_src>

<mosaic_0001>
module attributes {stable_mosaic.version = 11 : i64} {
  func.func @speed_kernel(%arg0: i32, %arg1: memref<8x1xf32, #tpu.memory_space<vmem>>, %arg2: memref<1x128xf32, #tpu.memory_space<vmem>>, %arg3: memref<1x128xf32, #tpu.memory_space<vmem>>, %arg4: memref<8x128xf32, #tpu.memory_space<vmem>>) attributes {dimension_semantics = [#tpu.dimension_semantics<parallel>], iteration_bounds = array<i64: 2>, scalar_prefetch = 0 : i64, scratch_operands = 0 : i64, tpu.core_type = #tpu.core_type<tc>, window_params = [{transform_indices = @transform_0, window_bounds = array<i64: 8, 1>}, {pipeline_mode = #tpu.pipeline_mode<synchronous>, transform_indices = @transform_1, window_bounds = array<i64: 1, 128>}, {pipeline_mode = #tpu.pipeline_mode<synchronous>, transform_indices = @transform_2, window_bounds = array<i64: 1, 128>}, {transform_indices = @transform_3, window_bounds = array<i64: 8, 128>}]} {
    %c0 = arith.constant 0 : index
    %c0_0 = arith.constant 0 : index
    %0 = vector.load %arg1[%c0, %c0_0] : memref<8x1xf32, #tpu.memory_space<vmem>>, vector<8x1xf32>
    %c0_1 = arith.constant 0 : index
    %c0_2 = arith.constant 0 : index
    %1 = vector.load %arg2[%c0_1, %c0_2] : memref<1x128xf32, #tpu.memory_space<vmem>>, vector<1x128xf32>
    %c0_3 = arith.constant 0 : index
    %c0_4 = arith.constant 0 : index
    %2 = vector.load %arg3[%c0_3, %c0_4] : memref<1x128xf32, #tpu.memory_space<vmem>>, vector<1x128xf32>
    %3 = vector.broadcast %0 : vector<8x1xf32> to vector<8x128xf32>
    %4 = vector.broadcast %1 : vector<1x128xf32> to vector<8x128xf32>
    %5 = arith.mulf %3, %4 : vector<8x128xf32>
    %6 = vector.broadcast %2 : vector<1x128xf32> to vector<8x128xf32>
    %7 = arith.addf %5, %6 : vector<8x128xf32>
    %cst = arith.constant 0.000000e+00 : f32
    %8 = vector.broadcast %cst : f32 to vector<8x128xf32>
    %9 = arith.maximumf %7, %8 : vector<8x128xf32>
    %c0_5 = arith.constant 0 : index
    %c0_6 = arith.constant 0 : index
    %10 = vector.load %arg4[%c0_5, %c0_6] : memref<8x128xf32, #tpu.memory_space<vmem>>, vector<8x128xf32>
    tpu.vector_store %arg4[%c0_5, %c0_6], %9 {strides = array<i32>} : memref<8x128xf32, #tpu.memory_space<vmem>>, vector<8x128xf32>,
    return
  }
  func.func @transform_0(%arg0: i32) -> (i32, i32) {
    %c0_i32 = arith.constant 0 : i32
    %c0_i32_0 = arith.constant 0 : i32
    return %arg0, %c0_i32 : i32, i32
  }
  func.func @transform_1(%arg0: i32) -> (i32, i32) {
    %c0_i32 = arith.constant 0 : i32
    %c0_i32_0 = arith.constant 0 : i32
    %c0_i32_1 = arith.constant 0 : i32
    return %c0_i32, %c0_i32_0 : i32, i32
  }
  func.func @transform_2(%arg0: i32) -> (i32, i32) {
    %c0_i32 = arith.constant 0 : i32
    %c0_i32_0 = arith.constant 0 : i32
    %c0_i32_1 = arith.constant 0 : i32
    return %c0_i32, %c0_i32_0 : i32, i32
  }
  func.func @transform_3(%arg0: i32) -> (i32, i32) {
    %c0_i32 = arith.constant 0 : i32
    %c0_i32_0 = arith.constant 0 : i32
    return %arg0, %c0_i32 : i32, i32
  }
}

</mosaic_0001>

<bundles_post_ra>
// kernel: tpu_custom_call.1
= control target key start
LH: loop header
LB: loop body
LE: loop exit
PB: predicated region body
PF: predicated region fallthrough
CT: control target
= control target key end

     0   :  { %8 = vsyncpa [#allocation3], 0  ;;  %s493_s0 = inlined_call_operand.vmem [shape: f32[16,1], index: 0, kind: input, shape index: {}]   ;;  %s494_s1 = inlined_call_operand.vmem [shape: f32[1,128], index: 1, kind: input, shape index: {}]   ;;  %s495_s2 = inlined_call_operand.vmem [shape: f32[1,128], index: 2, kind: input, shape index: {}]   ;;  %s496_s3 = inlined_call_operand.hbm [shape: f32[16,128], index: 3, kind: output, shape index: {}]  }
   0x1   :  { %10 = vsyncpa [#allocation3 + $0x1], 0  ;;  %s400_s12 = smov 0   ;;  %s402_s13 = smov 0  }
   0x2   :  { %s404_s14 = smov 0   ;;  %s406_s15 = smov 0  }
   0x3 LB: > { %s421_s16 = sadd.s32 4294967295, %s376_s15   ;;  %s263_s17 = sadd.s32 4294967294, %s376_s15   ;;  %s376_s15 = sphi %s406_s15, %s502_s15   ;;  %s372_s14 = sphi %s404_s14, %s501_s14   ;;  %s368_s13 = sphi %s402_s13, %s500_s13   ;;  %s364_s12 = sphi %s400_s12, %s499_s12  }
   0x4   : > { %s425_s18 = sadd.s32 1, %s376_s15   ;;  %s91_s19 = sadd.s32 1, %s372_s14 }
   0x5   : > { %s88_s20 = ssub.s32 %s376_s15, %s425_s18  ;;  %p101_p0 = scmp.ne.s32.totalorder %s372_s14, %s368_s13 }
   0x6   : > { %p89_p1 = scmp.eq.s32.totalorder %s88_s20, 0  ;;  %p102_p2 = scmp.eq.s32.totalorder %s421_s16, 1 }
   0x7   : > { %p107_p3 = scmp.ne.s32.totalorder %s368_s13, %s364_s12  ;;  %p108_p4 = scmp.eq.s32.totalorder %s263_s17, 1 }
   0x8   : > { %s436_s21 = scalar_select %p89_p1, %s372_s14, %s91_s19  }
   0x9   : > { %p438_p5 = por %p102_p2, %p101_p0  ;;  %p442_p6 = por %p108_p4, %p107_p3 }
   0xa   : > { %p266_p7 = scmp.ge.s32.totalorder %s376_s15, 1  ;;  %p139_p8 = scmp.lt.s32.totalorder %s376_s15, 3 }
   0xc   : > { %p140_p9 = pnand %p266_p7, %p139_p8 }
   0xd   : > { %p162_p10 = scmp.lt.s32.totalorder (!%p140_p9), %s421_s16, 1  ;;  %s159_s29 = sand.u32 (!%p140_p9), 1, %s368_s13  }
   0xe   : > { %143 = sbr.rel (%p140_p9) target bundleno = 167 (0xa7), region = 32  ;;  %s267_s30 = sshll.u32 (!%p140_p9), %s159_s29, 3 }
   0xf   : > { %s272_s8 = sshll.u32 (!%p140_p9), %s421_s16, 7  ;;  %s161_s9 = scalar_lea.vmem (!%p140_p9), [#allocation2], %s267_s30 }
  0x10   : > { %s204_s10 = sshll.u32 (!%p140_p9), %s161_s9, 4  ;;  %s202_s19 = scalar_lea.hbm (!%p140_p9), %s496_s3, %s272_s8  ;;  %s205_s10 = int_to_ptr.vmem [resolvable:$true] %s204_s10 }
  0x11   : > { %s191_s20 = scalar_lea.sflag (!%p140_p9), [#allocation3], %s159_s29 }
  0x13   : > { %v378_v0 = vmov 0   ;;  %s163_s24 = scalar_select %p162_p10, %s421_s16, 1  ;;  %v269_v2 = vld [vmem:[%s494_s1] ss:$0 sm:$0xff] }
  0x14   : > { %315 = vset.pattern.permute.xlu0 %v378_v0  ;;  %v270_v3 = vld [vmem:[%s495_s2] ss:$0 sm:$0xff] }
  0x15   : > { %s268_s25 = sshll.u32 %s163_s24, 3  ;;  %s316_s24 = scalar_lea.vmem %s205_s10, 128 }
  0x16   : > { %s165_s28 = scalar_lea.vmem %s493_s0, %s268_s25  ;;  %p317_p11 = scmp.ne.s32.totalorder %s205_s10, %s316_s24 }
  0x17   : > { %v166_v1 = vld [vmem:[%s165_s28] sm:$0xff]  ;;  %s379_s25 = smov [#allocation2]  }
  0x18   : > { %171 = vperm.xlu0 %315, %v166_v1   ;;  %p318_p12 = pnand %p317_p11, %p438_p5  ;;  %s320_s26 = sshll.u32 %s379_s25, 4  ;;  %s321_s26 = int_to_ptr.vmem [resolvable:$false] %s320_s26 }
  0x19   : > { %s322_s16 = scalar_lea.vmem %s321_s26, 256  ;;  %p323_p0 = scmp.lt.s32.totalorder %s205_s10, %s321_s26 }
  0x1a   : > { %p319_p13 = pneg %p318_p12  ;;  %p324_p1 = scmp.lt.s32.totalorder %s322_s16, %s316_s24 }
  0x1c   : > { %p325_p2 = por %p324_p1, %p323_p0 }
  0x1e   : > { %p326_p3 = pnand %p325_p2, %p319_p13 }
  0x93   : > { %v172_v4 = vpop.permute.xlu0 %171 }
  0x94   : > { %v180_v5 = vmul.f32 %v269_v2, %v172_v4 }
  0x96   : > { %v187_v6 = vadd.f32 %v270_v3, %v180_v5 }
  0x98   : > { %v188_v7 = vmax.f32 %v187_v6, 0.0 }
  0x9a   : > { %189 = vst [vmem:[%s161_s9] sm:$0xff] %v188_v7 }
  0x9b   : > { %329 = shalt.err (!%p326_p3)
}
  0x9c   : > { %s330_s27 = scalar_lea.hbm %s202_s19, 128  ;;  %s334_s30 = scalar_lea.hbm %s496_s3, 256 }
  0x9d   : > { %p331_p4 = scmp.ne.s32.totalorder %s202_s19, %s330_s27  ;;  %p335_p9 = scmp.lt.s32.totalorder %s202_s19, %s496_s3 }
  0x9e   : > { %p336_p10 = scmp.lt.s32.totalorder %s334_s30, %s330_s27 }
  0x9f   : > { %p332_p7 = pnand %p331_p4, %p438_p5 }
  0xa0   : > { %p337_p11 = por %p336_p10, %p335_p9 }
  0xa1   : > { %p333_p8 = pneg %p332_p7 }
  0xa3   : > { %p338_p12 = pnand %p337_p11, %p333_p8 }
  0xa5   : > { %341 = shalt.err (!%p338_p12)
}
  0xa6   : > { %275 = dma.vmem_to_hbm [thread:$0]  (%p438_p5), %s205_s10, 128, %s202_s19, %s191_s20  }
  0xa7 PF: > { %p281_p13 = scmp.ge.s32.totalorder %s376_s15, 2  ;;  %s216_s6 = sand.u32 1, %s364_s12  }
  0xa8   : > { %s217_s7 = scalar_lea.sflag [#allocation3], %s216_s6 }
  0xa9   : > { %p278_p0 = pnand %p281_p13, %p442_p6 }
  0xab   : > { %p279_p1 = pneg %p278_p0 }
  0xad   : > { %359 = dma.done.wait (%p279_p1), %s217_s7, 128  }
  0xae   : > { %361 = vsyncadd (%p279_p1), %s217_s7, 4294967168  ;;  %p13_p2 = scmp.ge.s32.totalorder %s425_s18, 4   ;;  %s499_s12 = smov %s368_s13 }
  0xaf   : > { %s500_s13 = smov %s372_s14  ;;  %s501_s14 = smov %s436_s21 }
  0xb0   : > { %s502_s15 = smov %s425_s18  ;;  %15 = sbr.rel (!%p13_p2) target bundleno = 3 (0x3), region = 67 }
  0xb5   :  { %222 = vsyncpa [#allocation3], 1 }
  0xb6   :  { %224 = vsyncpa [#allocation3 + $0x1], 1 }

</bundles_post_ra>
